<compile_context>
chip_gen: v7x
topology: tpu7x:2x2x1
jax: 0.10.0
libtpu: 0.0.40
codegen_flags: <defaults>
</compile_context>

<pallas_src>
import functools

import numpy as np
import jax
import jax.numpy as jnp
from jax import lax
from jax.experimental import pallas as pl
from jax.experimental.pallas import tpu as pltpu


def _normalized_kernel(scale_factor, kernel):
    if kernel is None:
        k1 = np.ones(scale_factor, dtype=np.float32)
    else:
        k1 = np.asarray(kernel, dtype=np.float32)
    assert k1.ndim == 1
    # outer(k, k) / sum(outer(k, k)) factors exactly into outer(k/sum(k), k/sum(k)).
    return k1 / np.sum(k1)


def _geometry(H, W, scale_factor, kh, extra_padding):
    padding = kh - scale_factor + extra_padding
    pad_a = (padding + 1) // 2      # top / left   (matches F.pad order in the module)
    pad_b = padding // 2            # bottom / right
    Ho = (H + pad_a + pad_b - kh) // scale_factor + 1
    Wo = (W + pad_a + pad_b - kh) // scale_factor + 1
    assert Ho > 0 and Wo > 0
    return pad_a, pad_b, Ho, Wo


def _make_taps(Hr, Ho, W, scale_factor, k_norm, pad_a):
    """Static (weight, src_row_start, dst_row_start, row_count, src_lane_start) per tap,
    on the (B, Hr, s*W) row-grouped view. Taps falling fully in the zero-pad region are
    dropped (they contribute 0)."""
    taps = []
    for ky in range(len(k_norm)):
        off = ky - pad_a
        q, r = divmod(off, scale_factor)   # original row i*s+off == group (i+q), lane block r
        i_lo = max(0, -q)
        i_hi = min(Ho - 1, Hr - 1 - q)
        if i_hi < i_lo:
            continue
        cnt = i_hi - i_lo + 1
        taps.append((float(k_norm[ky]), i_lo + q, i_lo, cnt, r * W))
    # Put a full-coverage tap first so the scratch is initialized by assignment, not zeroing.
    taps.sort(key=lambda t: 0 if (t[2] == 0 and t[3] == Ho) else 1)
    return tuple(taps)


def _make_hmat(W, Wo, Wo_lane, scale_factor, k_norm, pad_a, dtype):
    """(W, Wo_lane) horizontal blur+subsample matrix built in f32; the zero padding of x
    is absorbed (out-of-range source columns drop out); columns >= Wo are zero lane
    padding so the output stores stay lane-dense."""
    Hm = np.zeros((W, Wo_lane), dtype=np.float32)
    for j in range(Wo):
        for kx in range(len(k_norm)):
            w = j * scale_factor + kx - pad_a
            if 0 <= w < W:
                Hm[w, j] += k_norm[kx]
    return jnp.asarray(Hm, dtype=dtype)


def _pick_block_planes(B, in_plane, out_plane, scratch_plane, tmp_plane, fixed, budget):
    per_plane = 2 * in_plane + 2 * out_plane + scratch_plane + tmp_plane
    tb = (budget - fixed) // max(per_plane, 1)
    # Per-step pipeline overhead is ~0.35 us, so a few-MiB input block already sits on the
    # HBM roofline: prefer more, smaller steps (lower VMEM pressure on v7x, >= ~8 steps so
    # both v7x TCs have something to prefetch, better megacore load balance).
    target_in_block = 6 * 1024 * 1024
    tb = min(tb, max(1, target_in_block // max(in_plane, 1)))
    if B >= 8:
        tb = min(tb, -(-B // 8))
    elif B >= 2:
        tb = min(tb, -(-B // 2))
    return int(max(1, min(tb, B)))


def _downsample_kernel(x_ref, hm_ref, o_ref, t_ref, *, taps, compute_dtype, batched):
    # x_ref : (TB, Hr, s*W) row-grouped input planes
    # hm_ref: (W, Wo_lane)  horizontal blur matrix (constant across grid steps)
    # o_ref : (TB, Ho, Wo_lane)
    # t_ref : (TB, Ho, W) f32 scratch: vertically blurred + row-subsampled planes
    TB, Ho, W = t_ref.shape
    Wo_lane = o_ref.shape[2]

    # ---- vertical pass: kh-tap banded accumulation on the VPU (f32, exact weights) ----
    first_full = bool(taps) and taps[0][2] == 0 and taps[0][3] == Ho
    if not first_full:
        t_ref[...] = jnp.zeros_like(t_ref)
    for idx, (wgt, g_lo, i_lo, cnt, lane_lo) in enumerate(taps):
        xs = x_ref[:, g_lo:g_lo + cnt, lane_lo:lane_lo + W].astype(jnp.float32)
        if idx == 0 and first_full:
            t_ref[...] = wgt * xs
        else:
            t_ref[:, i_lo:i_lo + cnt, :] += wgt * xs

    # ---- horizontal pass: one batched MXU matmul across all planes in the block -------
    hm = hm_ref[...]
    if batched:
        tv = t_ref[...].astype(compute_dtype).reshape(TB * Ho, W)
        res = jnp.dot(tv, hm, preferred_element_type=jnp.float32)
        o_ref[...] = res.reshape(TB, Ho, Wo_lane).astype(o_ref.dtype)
    else:
        # Ho not a sublane multiple: avoid a relayouting reshape, loop planes instead.
        def body(b, carry):
            tb_ = t_ref[b].astype(compute_dtype)
            o_ref[b] = jnp.dot(tb_, hm,
                               preferred_element_type=jnp.float32).astype(o_ref.dtype)
            return carry
        lax.fori_loop(0, TB, body, 0, unroll=min(TB, 4))


def downsampling_layer(x, scale_factor=2, kernel=(1, 3, 3, 1), extra_padding=0,
                       compute_dtype=jnp.bfloat16):
    """Forward pass of DownsamplingLayer. x: (N, C, H, W) -> (N, C, Ho, Wo).

    Matches the PyTorch module's F.conv2d cross-correlation exactly; its `.flip(0, 1)` is
    applied to the two size-1 leading dims of the (1,1,kh,kh) buffer and is a no-op, so no
    spatial flip is applied here either. The vertical taps always run in f32 on the VPU;
    only the horizontal matmul uses `compute_dtype` (bf16 weights are exact for the
    default (1,3,3,1)/8 kernel; pass jnp.float32 for a full-precision path with arbitrary
    kernels). The kernel is HBM-bound at medium/large maps, so passing bf16 activations
    (and getting bf16 out) halves HBM traffic.
    """
    assert x.ndim == 4
    assert scale_factor >= 1
    if extra_padding != 0:
        assert scale_factor == 1

    N, C, H, W = x.shape
    B = N * C
    s = scale_factor

    k_norm = _normalized_kernel(s, kernel)
    kh = k_norm.shape[0]
    pad_a, pad_b, Ho, Wo = _geometry(H, W, s, kh, extra_padding)

    # Row-grouped view: (B, H, W) -> (B, H/s, s*W). Metadata-only reshape; turns the
    # strided vertical taps into contiguous sublane slices + static lane-block slices.
    # If H is not divisible by s (rare), zero-pad rows first (zeros == conv zero padding).
    H_pad = -(-H // s) * s
    if H_pad != H:
        x = jnp.pad(x, ((0, 0), (0, 0), (0, H_pad - H), (0, 0)))
    Hr = H_pad // s
    xr = x.reshape(B, Hr, s * W)

    # Lane-dense output: pad Wo up to a multiple of 128 via zero columns of Hm.
    Wo_lane = Wo if Wo % 128 == 0 else (-(-Wo // 128)) * 128

    hm = _make_hmat(W, Wo, Wo_lane, s, k_norm, pad_a, compute_dtype)
    taps = _make_taps(Hr, Ho, W, s, k_norm, pad_a)

    out_dtype = x.dtype
    c_isz = jnp.dtype(compute_dtype).itemsize
    o_isz = jnp.dtype(out_dtype).itemsize

    # ---- generation-aware VMEM sizing (v7x: 64 MiB physical; v5e/v6e: 128 MiB) --------
    try:
        vmem_cap = int(pltpu.get_tpu_info().vmem_capacity_bytes)
    except Exception:
        vmem_cap = 64 * 1024 * 1024            # assume the smallest (v7x per-core)
    vmem_limit = int(min(vmem_cap // 2, 48 * 1024 * 1024))   # 32 MiB on v7x, 48 MiB else
    budget = (vmem_limit * 3) // 4             # headroom for Mosaic internal scratch

    in_plane = Hr * s * W * x.dtype.itemsize
    out_plane = Ho * Wo_lane * o_isz
    scratch_plane = Ho * W * 4
    tmp_plane = Ho * W * c_isz + Ho * Wo_lane * (4 + o_isz)   # live matmul temporaries
    fixed = 2 * W * Wo_lane * c_isz                           # Hm, double-buffered

    TB = _pick_block_planes(B, in_plane, out_plane, scratch_plane, tmp_plane, fixed, budget)
    grid = (pl.cdiv(B, TB),)                   # ragged last block: OOB writes are dropped
    batched = (Ho % 8 == 0) or (TB == 1)

    out = pl.pallas_call(
        functools.partial(_downsample_kernel, taps=taps,
                          compute_dtype=compute_dtype, batched=batched),
        out_shape=jax.ShapeDtypeStruct((B, Ho, Wo_lane), out_dtype),
        grid_spec=pltpu.PrefetchScalarGridSpec(
            num_scalar_prefetch=0,
            grid=grid,
            in_specs=[
                pl.BlockSpec((TB, Hr, s * W), lambda b: (b, 0, 0)),
                pl.BlockSpec((W, Wo_lane), lambda b: (0, 0)),   # constant -> fetched once
            ],
            out_specs=pl.BlockSpec((TB, Ho, Wo_lane), lambda b: (b, 0, 0)),
            scratch_shapes=[pltpu.VMEM((TB, Ho, W), jnp.float32)],
        ),
        compiler_params=pltpu.CompilerParams(
            dimension_semantics=("parallel",),
            vmem_limit_bytes=vmem_limit,
        ),
    )(xr, hm)

    if Wo_lane != Wo:
        out = out[..., :Wo]
    return out.reshape(N, C, Ho, Wo)


def _reference(x, scale_factor=2, kernel=(1, 3, 3, 1), extra_padding=0):
    """Pure-JAX f32 reference mirroring the PyTorch forward (correctness check)."""
    k1 = np.array(kernel, dtype=np.float32)
    k2d = np.outer(k1, k1)
    k2d = k2d / np.sum(k2d)
    kh = k2d.shape[0]
    padding = kh - scale_factor + extra_padding
    pad_a = (padding + 1) // 2
    pad_b = padding // 2

    N, C, H, W = x.shape
    xf = x.reshape(N * C, 1, H, W)
    xp = jnp.pad(xf, ((0, 0), (0, 0), (pad_a, pad_b), (pad_a, pad_b)))
    w = jnp.asarray(k2d)[None, None]  # (1, 1, kh, kh)
    y = jax.lax.conv_general_dilated(
        xp, w, window_strides=(scale_factor, scale_factor), padding="VALID",
        dimension_numbers=("NCHW", "OIHW", "NCHW"),
    )
    return y.reshape(N, C, y.shape[2], y.shape[3])


if __name__ == "__main__":
    key = jax.random.PRNGKey(0)
    k1, k2 = jax.random.split(key)

    x = jax.random.normal(k1, (2, 4, 16, 16), dtype=jnp.float32)
    out = jax.block_until_ready(downsampling_layer(x))
    ref = _reference(x)
    assert out.shape == (2, 4, 8, 8), out.shape
    # bf16 horizontal matmul with f32 accumulation -> loosened tolerance vs f32 reference.
    np.testing.assert_allclose(np.asarray(out), np.asarray(ref), rtol=2e-2, atol=2e-2)

    # Exercise the ragged last plane-block path (B = N*C not a multiple of TB).
    x2 = jax.random.normal(k2, (1, 3, 16, 16), dtype=jnp.float32)
    out2 = jax.block_until_ready(downsampling_layer(x2))
    ref2 = _reference(x2)
    assert out2.shape == (1, 3, 8, 8), out2.shape
    np.testing.assert_allclose(np.asarray(out2), np.asarray(ref2), rtol=2e-2, atol=2e-2)

    print("KERNEL_OK")
</pallas_src>

<mosaic_0001>
module attributes {stable_mosaic.version = 11 : i64} {
  func.func @_downsample_kernel(%arg0: i32, %arg1: memref<1x8x32xf32, #tpu.memory_space<vmem>>, %arg2: memref<16x128xbf16, #tpu.memory_space<vmem>>, %arg3: memref<1x8x128xf32, #tpu.memory_space<vmem>>, %arg4: memref<1x8x16xf32, #tpu.memory_space<vmem>>) attributes {dimension_semantics = [#tpu.dimension_semantics<parallel>], iteration_bounds = array<i64: 8>, scalar_prefetch = 0 : i64, scratch_operands = 1 : i64, tpu.core_type = #tpu.core_type<tc>, window_params = [{transform_indices = @transform_0, window_bounds = array<i64: 1, 8, 32>}, {pipeline_mode = #tpu.pipeline_mode<synchronous>, transform_indices = @transform_1, window_bounds = array<i64: 16, 128>}, {transform_indices = @transform_2, window_bounds = array<i64: 1, 8, 128>}]} {
    %c0 = arith.constant 0 : index
    %c0_0 = arith.constant 0 : index
    %c0_1 = arith.constant 0 : index
    %0 = vector.load %arg1[%c0, %c0_0, %c0_1] : memref<1x8x32xf32, #tpu.memory_space<vmem>>, vector<1x8x16xf32>
    %cst = arith.constant 3.750000e-01 : f32
    %1 = vector.broadcast %cst : f32 to vector<1x8x16xf32>
    %2 = arith.mulf %1, %0 : vector<1x8x16xf32>
    %c0_2 = arith.constant 0 : index
    %c0_3 = arith.constant 0 : index
    %c0_4 = arith.constant 0 : index
    %3 = vector.load %arg4[%c0_2, %c0_3, %c0_4] : memref<1x8x16xf32, #tpu.memory_space<vmem>>, vector<1x8x16xf32>
    tpu.vector_store %arg4[%c0_2, %c0_3, %c0_4], %2 {strides = array<i32>} : memref<1x8x16xf32, #tpu.memory_space<vmem>>, vector<1x8x16xf32>,
    %c0_5 = arith.constant 0 : index
    %c0_6 = arith.constant 0 : index
    %c16 = arith.constant 16 : index
    %4 = vector.load %arg1[%c0_5, %c0_6, %c16] : memref<1x8x32xf32, #tpu.memory_space<vmem>>, vector<1x8x16xf32>
    %c0_7 = arith.constant 0 : index
    %c0_8 = arith.constant 0 : index
    %c0_9 = arith.constant 0 : index
    %5 = vector.load %arg4[%c0_7, %c0_8, %c0_9] : memref<1x8x16xf32, #tpu.memory_space<vmem>>, vector<1x8x16xf32>
    %cst_10 = arith.constant 3.750000e-01 : f32
    %6 = vector.broadcast %cst_10 : f32 to vector<1x8x16xf32>
    %7 = arith.mulf %6, %4 : vector<1x8x16xf32>
    %8 = arith.addf %5, %7 : vector<1x8x16xf32>
    %c0_11 = arith.constant 0 : index
    %c0_12 = arith.constant 0 : index
    %c0_13 = arith.constant 0 : index
    %9 = vector.load %arg4[%c0_11, %c0_12, %c0_13] : memref<1x8x16xf32, #tpu.memory_space<vmem>>, vector<1x8x16xf32>
    tpu.vector_store %arg4[%c0_11, %c0_12, %c0_13], %8 {strides = array<i32>} : memref<1x8x16xf32, #tpu.memory_space<vmem>>, vector<1x8x16xf32>,
    %c0_14 = arith.constant 0 : index
    %c0_15 = arith.constant 0 : index
    %c16_16 = arith.constant 16 : index
    %10 = vector.load %arg1[%c0_14, %c0_15, %c16_16] : memref<1x8x32xf32, #tpu.memory_space<vmem>>, vector<1x7x16xf32>
    %c0_17 = arith.constant 0 : index
    %c1 = arith.constant 1 : index
    %c0_18 = arith.constant 0 : index
    %11 = vector.load %arg4[%c0_17, %c1, %c0_18] : memref<1x8x16xf32, #tpu.memory_space<vmem>>, vector<1x7x16xf32>
    %cst_19 = arith.constant 1.250000e-01 : f32
    %12 = vector.broadcast %cst_19 : f32 to vector<1x7x16xf32>
    %13 = arith.mulf %12, %10 : vector<1x7x16xf32>
    %14 = arith.addf %11, %13 : vector<1x7x16xf32>
    %c0_20 = arith.constant 0 : index
    %c1_21 = arith.constant 1 : index
    %c0_22 = arith.constant 0 : index
    %15 = vector.load %arg4[%c0_20, %c1_21, %c0_22] : memref<1x8x16xf32, #tpu.memory_space<vmem>>, vector<1x7x16xf32>
    tpu.vector_store %arg4[%c0_20, %c1_21, %c0_22], %14 {strides = array<i32>} : memref<1x8x16xf32, #tpu.memory_space<vmem>>, vector<1x7x16xf32>,
    %c0_23 = arith.constant 0 : index
    %c1_24 = arith.constant 1 : index
    %c0_25 = arith.constant 0 : index
    %16 = vector.load %arg1[%c0_23, %c1_24, %c0_25] : memref<1x8x32xf32, #tpu.memory_space<vmem>>, vector<1x7x16xf32>
    %c0_26 = arith.constant 0 : index
    %c0_27 = arith.constant 0 : index
    %c0_28 = arith.constant 0 : index
    %17 = vector.load %arg4[%c0_26, %c0_27, %c0_28] : memref<1x8x16xf32, #tpu.memory_space<vmem>>, vector<1x7x16xf32>
    %cst_29 = arith.constant 1.250000e-01 : f32
    %18 = vector.broadcast %cst_29 : f32 to vector<1x7x16xf32>
    %19 = arith.mulf %18, %16 : vector<1x7x16xf32>
    %20 = arith.addf %17, %19 : vector<1x7x16xf32>
    %c0_30 = arith.constant 0 : index
    %c0_31 = arith.constant 0 : index
    %c0_32 = arith.constant 0 : index
    %21 = vector.load %arg4[%c0_30, %c0_31, %c0_32] : memref<1x8x16xf32, #tpu.memory_space<vmem>>, vector<1x7x16xf32>
    tpu.vector_store %arg4[%c0_30, %c0_31, %c0_32], %20 {strides = array<i32>} : memref<1x8x16xf32, #tpu.memory_space<vmem>>, vector<1x7x16xf32>,
    %c0_33 = arith.constant 0 : index
    %c0_34 = arith.constant 0 : index
    %22 = vector.load %arg2[%c0_33, %c0_34] : memref<16x128xbf16, #tpu.memory_space<vmem>>, vector<16x128xbf16>
    %c0_35 = arith.constant 0 : index
    %c0_36 = arith.constant 0 : index
    %c0_37 = arith.constant 0 : index
    %23 = vector.load %arg4[%c0_35, %c0_36, %c0_37] : memref<1x8x16xf32, #tpu.memory_space<vmem>>, vector<1x8x16xf32>
    %24 = arith.truncf %23 : vector<1x8x16xf32> to vector<1x8x16xbf16>
    %25 = vector.shape_cast %24 : vector<1x8x16xbf16> to vector<8x16xbf16>
    %cst_38 = arith.constant dense<0.000000e+00> : vector<8x128xf32>
    %26 = tpu.matmul %25, %22, %cst_38 {dimension_numbers = #tpu.dot_dimension_numbers<[1], [0], [0], [1], [0, 0, 1, 1], [], []>} : vector<8x16xbf16>, vector<16x128xbf16>, vector<8x128xf32> -> vector<8x128xf32>
    %27 = vector.shape_cast %26 : vector<8x128xf32> to vector<1x8x128xf32>
    %c0_39 = arith.constant 0 : index
    %c0_40 = arith.constant 0 : index
    %c0_41 = arith.constant 0 : index
    %28 = vector.load %arg3[%c0_39, %c0_40, %c0_41] : memref<1x8x128xf32, #tpu.memory_space<vmem>>, vector<1x8x128xf32>
    tpu.vector_store %arg3[%c0_39, %c0_40, %c0_41], %27 {strides = array<i32>} : memref<1x8x128xf32, #tpu.memory_space<vmem>>, vector<1x8x128xf32>,
    return
  }
  func.func @transform_0(%arg0: i32) -> (i32, i32, i32) {
    %c0_i32 = arith.constant 0 : i32
    %c0_i32_0 = arith.constant 0 : i32
    %c0_i32_1 = arith.constant 0 : i32
    return %arg0, %c0_i32, %c0_i32_0 : i32, i32, i32
  }
  func.func @transform_1(%arg0: i32) -> (i32, i32) {
    %c0_i32 = arith.constant 0 : i32
    %c0_i32_0 = arith.constant 0 : i32
    %c0_i32_1 = arith.constant 0 : i32
    return %c0_i32, %c0_i32_0 : i32, i32
  }
  func.func @transform_2(%arg0: i32) -> (i32, i32, i32) {
    %c0_i32 = arith.constant 0 : i32
    %c0_i32_0 = arith.constant 0 : i32
    %c0_i32_1 = arith.constant 0 : i32
    return %arg0, %c0_i32, %c0_i32_0 : i32, i32, i32
  }
}

</mosaic_0001>

<bundles_post_ra>
// kernel: tpu_custom_call.1
= control target key start
LH: loop header
LB: loop body
LE: loop exit
PB: predicated region body
PF: predicated region fallthrough
CT: control target
= control target key end

     0   :  { %7 = vsyncpa [#allocation4], 0  ;;  %s785_s0 = inlined_call_operand.hbm [shape: f32[8,8,32], index: 0, kind: input, shape index: {}]   ;;  %s786_s1 = inlined_call_operand.hbm [shape: bf16[16,128], index: 1, kind: input, shape index: {}]   ;;  %s787_s2 = inlined_call_operand.hbm [shape: f32[8,8,128], index: 2, kind: output, shape index: {}]  }
   0x1   :  { %9 = vsyncpa [#allocation4 + $0x1], 0 }
   0x2   :  { %10 = vsyncpa [#allocation7], 0 }
   0x3   :  { %11 = vsyncpa [#allocation5], 0 }
   0x4   :  { %13 = vsyncpa [#allocation5 + $0x1], 0  ;;  %s591_s9 = smov 0   ;;  %s593_s10 = smov 0  }
   0x5   :  { %s595_s11 = smov 0   ;;  %s597_s12 = smov 0  }
   0x6 LB: > { %s612_s13 = sadd.s32 4294967295, %s566_s12   ;;  %s351_s14 = sadd.s32 4294967294, %s566_s12   ;;  %s566_s12 = sphi %s597_s12, %s806_s12   ;;  %s562_s11 = sphi %s595_s11, %s805_s11   ;;  %s558_s10 = sphi %s593_s10, %s804_s10   ;;  %s554_s9 = sphi %s591_s9, %s803_s9  }
   0x7   : > { %p39_p0 = scmp.ne.s32.totalorder %s558_s10, %s554_s9  ;;  %p788_p1 = scmp.eq.s32.totalorder %s612_s13, 0 }
   0x8   : > { %p90_p3 = scmp.eq.s32.totalorder %s351_s14, 7  ;;  %p352_p5 = scmp.ge.s32.totalorder %s566_s12, 1 }
   0x9   : > { %p621_p4 = por %p788_p1, %p39_p0  ;;  %p97_p7 = scmp.lt.s32.totalorder %s566_s12, 9 }
   0xa   : > { %p626_p6 = por %p90_p3, %p39_p0  ;;  %s568_s18 = smov [#allocation6]  }
   0xb   : > { %s791_s15 = scalar_select %p621_p4, 1, 0 }
   0xc   : > { %s792_s16 = scalar_select %p626_p6, 1, 0 }
   0xd   : > { %p631_p8 = pnand %p352_p5, %p97_p7  ;;  %s109_s19 = sshll.u32 %s568_s18, 4  ;;  %s110_s19 = int_to_ptr.vmem [resolvable:$true] %s109_s19 }
   0xe   : > { %s644_s21 = sadd.s32 1, %s566_s12   ;;  %s26_s22 = sadd.s32 1, %s562_s11 }
   0xf   : > { %s793_s17 = scalar_select %p631_p8, 1, 0 }
  0x10   : > { %p383_p9 = pneg %p631_p8  ;;  %s23_s23 = ssub.s32 %s566_s12, %s644_s21 }
  0x11   : > { %s438_s26 = scalar_lea.hbm %s786_s1, 128 }
  0x12   : > { %p639_p10 = pnand %p383_p9, %p788_p1  ;;  %p439_p11 = scmp.ne.s32.totalorder %s786_s1, %s438_s26 }
  0x13   : > { %p445_p3 = scmp.lt.u32.totalorder %s438_s26, %s786_s1 }
  0x14   : > { %p440_p12 = pneg %p639_p10 }
  0x16   : > { %p441_p13 = pnand %p440_p12, %p439_p11 }
  0x18   : > { %p442_p0 = pneg %p441_p13 }
  0x1a   : > { %p447_p5 = pnand %p445_p3, %p442_p0 }
  0x1c   : > { %450 = shalt.err (!%p447_p5)
}
  0x1d   : > { %s451_s3 = scalar_lea.vmem %s110_s19, 128  ;;  %p459_p2 = scmp.lt.s32.totalorder %s110_s19, %s110_s19 }
  0x1e   : > { %p452_p7 = scmp.ne.s32.totalorder %s110_s19, %s451_s3  ;;  %p460_p6 = scmp.lt.s32.totalorder %s451_s3, %s451_s3 }
  0x20   : > { %p454_p9 = pnand %p452_p7, %p440_p12  ;;  %p461_p4 = por %p460_p6, %p459_p2 }
  0x22   : > { %p455_p1 = pneg %p454_p9 }
  0x24   : > { %p462_p8 = pnand %p461_p4, %p455_p1 }
  0x26   : > { %465 = shalt.err (!%p462_p8)
}
  0x27   : > { %s569_s4 = smov 64   ;;  %s570_s5 = smov 4  }
  0x28   : > { %386 = dma.hbm_to_vmem [thread:$0]  (!%p639_p10), %s786_s1, 128, %s110_s19, [#allocation7], %s569_s4, %s569_s4, %s570_s5  }
  0x29   : > { %p24_p11 = scmp.eq.s32.totalorder %s23_s23, 0  ;;  %p33_p2 = scmp.ne.s32.totalorder %s562_s11, %s558_s10 }
  0x2a   : > { %p34_p1 = scmp.eq.s32.totalorder %s566_s12, 0  ;;  %p396_p4 = scmp.lt.s32.totalorder %s566_s12, 8 }
  0x2b   : > { %s670_s8 = scalar_select %p24_p11, %s562_s11, %s26_s22  }
  0x2c   : > { %p35_p6 = por %p34_p1, %p33_p2  ;;  %p795_p8 = scmp.eq.s32.totalorder %s612_s13, 7 }
  0x2d   : > { %s123_s18 = sand.u32 1, %s562_s11   ;;  %s356_s24 = sshll.u32 %s566_s12, 7 }
  0x2e   : > { %p674_p12 = por %p795_p8, %p33_p2  ;;  %s355_s25 = sshll.u32 %s123_s18, 3 }
  0x2f   : > { %s683_s27 = scalar_lea.hbm %s785_s0, %s356_s24  ;;  %s127_s19 = scalar_lea.vmem [#allocation3], %s355_s25 }
  0x30   : > { %s134_s22 = sshll.u32 %s127_s19, 4  ;;  %p685_p10 = pnand %p396_p4, %p35_p6  ;;  %s689_s22 = int_to_ptr.vmem [resolvable:$true] %s134_s22 }
  0x31   : > { %s124_s28 = scalar_lea.sflag [#allocation4], %s123_s18  ;;  %s466_s29 = scalar_lea.hbm %s683_s27, 128 }
  0x32   : > { %p467_p13 = scmp.ne.s32.totalorder %s683_s27, %s466_s29  ;;  %p468_p0 = pneg %p685_p10 }
  0x33   : > { %s471_s4 = scalar_lea.hbm %s785_s0, 1024  ;;  %p472_p7 = scmp.lt.u32.totalorder %s683_s27, %s785_s0 }
  0x34   : > { %p469_p3 = pnand %p468_p0, %p467_p13  ;;  %p473_p9 = scmp.lt.u32.totalorder %s471_s4, %s466_s29 }
  0x35   : > { %p475_p2 = scmp.lt.u32.totalorder %s466_s29, %s683_s27 }
  0x36   : > { %p470_p5 = pneg %p469_p3  ;;  %p474_p11 = por %p473_p9, %p472_p7 }
  0x38   : > { %p476_p1 = por %p475_p2, %p474_p11 }
  0x3a   : > { %p477_p4 = pnand %p476_p1, %p470_p5 }
  0x3c   : > { %480 = shalt.err (!%p477_p4)
}
  0x3d   : > { %s481_s7 = scalar_lea.vmem %s689_s22, 128  ;;  %s571_s18 = smov [#allocation3]  }
  0x3e   : > { %p482_p6 = scmp.ne.s32.totalorder %s689_s22, %s481_s7  ;;  %s486_s24 = sshll.u32 %s571_s18, 4  ;;  %s487_s24 = int_to_ptr.vmem [resolvable:$false] %s486_s24 }
  0x3f   : > { %s488_s25 = scalar_lea.vmem %s487_s24, 256  ;;  %p489_p3 = scmp.lt.s32.totalorder %s689_s22, %s487_s24 }
  0x40   : > { %p484_p8 = pnand %p482_p6, %p468_p0  ;;  %p490_p7 = scmp.lt.s32.totalorder %s488_s25, %s481_s7 }
  0x42   : > { %p485_p13 = pneg %p484_p8  ;;  %p491_p9 = por %p490_p7, %p489_p3 }
  0x44   : > { %p492_p11 = pnand %p491_p9, %p485_p13 }
  0x46   : > { %495 = shalt.err (!%p492_p11)
}
  0x47   : > { %390 = dma.hbm_to_vmem [thread:$0]  (!%p685_p10), %s683_s27, 128, %s689_s22, %s124_s28  }
  0x48   : > { %p798_p5 = scmp.ne.s32.totalorder %s793_s17, 0 }
  0x49   : > { %s719_s20 = sand.u32 (!%p798_p5), 1, %s558_s10   ;;  %p799_p0 = scmp.ne.s32.totalorder (!%p798_p5), %s791_s15, 0 }
  0x4a   : > { %143 = sbr.rel (%p798_p5) target bundleno = 462 (0x1ce), region = 28  ;;  %s358_s26 = sshll.u32 (!%p798_p5), %s719_s20, 3 }
  0x4b   : > { %s146_s19 = scalar_lea.sflag (!%p798_p5), [#allocation4], %s719_s20  ;;  %s149_s29 = scalar_lea.vmem (!%p798_p5), [#allocation3], %s358_s26 }
  0x51   : > { %541 = dma.done.wait (%p799_p0), %s146_s19, 128  }
  0x52   : > { %543 = vsyncadd (%p799_p0), %s146_s19, 4294967168  ;;  %p800_p10 = scmp.eq.s32.totalorder %s612_s13, 0 }
  0x54   : > { %545 = dma.done.wait (%p800_p10), [#allocation7], 128   ;;  %p801_p2 = pmov %p800_p10 }
  0x55   : > { %v179_v0 = vld [vmem:[%s149_s29] sm:$0xff]  ;;  %vm177_vm0 = vcmask 130048   ;;  %s572_s17 = smov 112   ;;  %v437_v4 = vld [vmem:[#allocation6] sm:$0xff]   ;;  %v573_v5 = vmov 0.0   ;;  %vm574_vm1 = vmmov 0  }
  0x56   : > { %547 = vsyncadd (%p801_p2), [#allocation7], 4294967168  ;;  %v188_v1 = vld [vmem:[%s149_s29] sm:$0x7f]  ;;  %v181_v2 = vmul.f32 0.375, %v179_v0  ;;  %369 = vmatprep.subr.bf16.mxu0 %v573_v5  ;;  %371 = vmatprep.mubr.msk.bf16.mxu0 %vm574_vm1, %v573_v5  ;;  %vm196_vm2 = vcmask 129024  }
  0x57   : > { %v190_v3 = vmul.f32 0.125, %v188_v1  ;;  %370 = vmatpush3.bf16.msra.mxu0 %v437_v4  ;;  %v198_v12 = vld [vmem:[%s149_s29 + $0x1] sm:$0x7f]  ;;  %s173_s15 = scalar_lea.vmem [#allocation8], %s358_s26  ;;  %s364_s22 = sshll.u32 %s612_s13, 7 }
  0x58   : > { %183 = vrot.lane.b32.xlu0 %v181_v2, %s572_s17  ;;  %178 = vst.msk [vmem:[#allocation2] sm:$0xff] %vm177_vm0, %v181_v2  ;;  %v200_v13 = vmul.f32 0.125, %v198_v12  ;;  %s271_s27 = sshll.u32 %s173_s15, 4  ;;  %s744_s30 = scalar_lea.hbm %s787_s2, %s364_s22  ;;  %s739_s27 = int_to_ptr.vmem [resolvable:$true] %s271_s27 }
  0x59   : > { %s258_s3 = scalar_lea.sflag [#allocation5], %s719_s20  ;;  %s496_s4 = scalar_lea.vmem %s739_s27, 128 }
  0x5a   : > { %p497_p1 = scmp.ne.s32.totalorder %s739_s27, %s496_s4  ;;  %s575_s13 = smov [#allocation8]  }
  0x5b   : > { %s500_s5 = sshll.u32 %s575_s13, 4  ;;  %s501_s5 = int_to_ptr.vmem [resolvable:$false] %s500_s5 }
  0x5c   : > { %192 = vrot.lane.b32.xlu0 %v190_v3, %s572_s17  ;;  %p498_p4 = pnand %p497_p1, %p674_p12  ;;  %s502_s6 = scalar_lea.vmem %s501_s5, 256 }
  0x5d   : > { %p503_p8 = scmp.lt.s32.totalorder %s739_s27, %s501_s5  ;;  %p504_p13 = scmp.lt.s32.totalorder %s502_s6, %s496_s4 }
  0x5e   : > { %p499_p6 = pneg %p498_p4 }
  0x5f   : > { %v180_v6 = vld [vmem:[#allocation2] sm:$0xff]  ;;  %p505_p3 = por %p504_p13, %p503_p8 }
  0x61   : > { %p506_p7 = pnand %p505_p3, %p499_p6 }
  0xca   : > { %v184_v7 = vpop.permute.xlu0 %183 }
  0xcb   : > { %v186_v8 = vadd.f32 %v184_v7, %v180_v6 }
  0xcd   : > { %187 = vst.msk [vmem:[#allocation2] sm:$0xff] %vm177_vm0, %v186_v8 }
  0xce   : > { %v193_v9 = vpop.permute.xlu0 %192 }
  0xd4   : > { %v189_v10 = vld [vmem:[#allocation2 + $0x1] sm:$0x7f] }
  0xd5   : > { %v195_v11 = vadd.f32 %v193_v9, %v189_v10 }
  0xd7   : > { %197 = vst.msk [vmem:[#allocation2 + $0x1] sm:$0x7f] %vm196_vm2, %v195_v11 }
  0xde   : > { %v199_v14 = vld [vmem:[#allocation2] sm:$0x7f] }
  0xdf   : > { %v201_v15 = vadd.f32 %v200_v13, %v199_v14 }
  0xe1   : > { %202 = vst.msk [vmem:[#allocation2] sm:$0x7f] %vm196_vm2, %v201_v15 }
  0xe8   : > { %v205_v16 = vld [vmem:[#allocation2] sm:$0xff] }
  0xe9   : > { %v206_v17 = vpack.c.bf16 %v205_v16, %v205_v16 }
  0xeb   : > { %372 = vmatmul.mubr.msk.bf16.vlgmr.msra.gmra.mrb[0].mxu0 %vm177_vm0, %v206_v17 }
 0x1be   : > { %v250_v18 = vpop.f32.mrb[0].mxu0 }
 0x1bf   : > { %256 = vst [vmem:[%s173_s15] sm:$0xff] %v250_v18  ;;  %v373_v19 = vpop.f32.mrb[1].mxu0 }
 0x1c0   : > { %v253_v20 = vpop.f32.mrb[2].mxu0 }
 0x1c1   : > { %509 = shalt.err (!%p506_p7)
}
 0x1c2   : > { %s510_s7 = scalar_lea.hbm %s744_s30, 128  ;;  %s514_s25 = scalar_lea.hbm %s787_s2, 1024 }
 0x1c3   : > { %p511_p9 = scmp.ne.s32.totalorder %s744_s30, %s510_s7  ;;  %p515_p0 = scmp.lt.u32.totalorder %s744_s30, %s787_s2 }
 0x1c4   : > { %p516_p10 = scmp.lt.u32.totalorder %s514_s25, %s510_s7  ;;  %p518_p1 = scmp.lt.u32.totalorder %s510_s7, %s744_s30 }
 0x1c5   : > { %p512_p11 = pnand %p511_p9, %p674_p12 }
 0x1c6   : > { %p517_p2 = por %p516_p10, %p515_p0 }
 0x1c7   : > { %p513_p5 = pneg %p512_p11 }
 0x1c8   : > { %p519_p4 = por %p518_p1, %p517_p2 }
 0x1ca   : > { %p520_p6 = pnand %p519_p4, %p513_p5 }
 0x1cc   : > { %523 = shalt.err (!%p520_p6)
}
 0x1cd   : > { %381 = dma.vmem_to_hbm [thread:$0]  (%p674_p12), %s739_s27, 128, %s744_s30, %s258_s3   ;;  %v374_v21 = vpop.f32.mrb[3].mxu0 }
 0x1ce PF: > { %p398_p8 = scmp.ge.s32.totalorder %s566_s12, 2  ;;  %s283_s19 = sand.u32 1, %s554_s9  }
 0x1cf   : > { %p802_p13 = scmp.ne.s32.totalorder %s792_s16, 0  ;;  %s284_s29 = scalar_lea.sflag [#allocation5], %s283_s19 }
 0x1d1   : > { %p392_p3 = pnand %p398_p8, %p802_p13 }
 0x1d3   : > { %549 = dma.done.wait (!%p392_p3), %s284_s29, 128  }
 0x1d4   : > { %551 = vsyncadd (!%p392_p3), %s284_s29, 4294967168  ;;  %p16_p7 = scmp.ge.s32.totalorder %s644_s21, 10   ;;  %s803_s9 = smov %s558_s10 }
 0x1d5   : > { %s804_s10 = smov %s562_s11  ;;  %s805_s11 = smov %s670_s8 }
 0x1d6   : > { %s806_s12 = smov %s644_s21  ;;  %18 = sbr.rel (!%p16_p7) target bundleno = 6 (0x6), region = 77 }
 0x1dd   :  { %289 = vsyncpa [#allocation4], 1 }
 0x1de   :  { %291 = vsyncpa [#allocation4 + $0x1], 1 }
 0x1df   :  { %292 = vsyncpa [#allocation7], 1 }
 0x1e0   :  { %293 = vsyncpa [#allocation5], 1 }
 0x1e1   :  { %295 = vsyncpa [#allocation5 + $0x1], 1 }

</bundles_post_ra>
